<compile_context>
chip_gen: v5e
topology: v5e:2x2
jax: 0.10.0
libtpu: 0.0.40
codegen_flags: <defaults>
</compile_context>

<pallas_src>
import functools
import math

import jax
import jax.numpy as jnp
from jax.experimental import pallas as pl
from jax.experimental.pallas import tpu as pltpu


def _round_up(x: int, m: int) -> int:
    return (x + m - 1) // m * m


def _choose_tiles(n_per_plane, f, itemsize):
    """Per-plane node tiles sized against the lane-padded VMEM footprint."""
    f_pad = _round_up(max(f, 1), 128)          # minor dim pads to 128 lanes in VMEM
    num_planes = len(n_per_plane)
    # Double-buffered x block + (tile, 1) f32 output block, per node of tile.
    per_node = 2 * (f_pad * itemsize + 128 * 4)
    budget = 20 << 20                          # total block budget; safe on v5e/v6e/v7x
    cap = max(128, (budget // max(1, num_planes * per_node)) // 128 * 128)
    tiles = [int(min(cap, _round_up(n, 16))) for n in n_per_plane]
    return tiles, f_pad


@functools.lru_cache(maxsize=None)
def _build_forward(n_per_plane, f, dtype_name):
    """Build (and cache) the fused all-planes pallas_call for a static config."""
    dtype = jnp.dtype(dtype_name)
    num_planes = len(n_per_plane)
    tiles_n, f_pad = _choose_tiles(n_per_plane, f, dtype.itemsize)
    n_tiles = [(n + t - 1) // t for n, t in zip(n_per_plane, tiles_n)]
    starts, s = [], 0
    for c in n_tiles:
        starts.append(s)
        s += c
    total_steps = s

    def make_idx(start, count):
        # Monotone, clamped block index: 0 before the plane's range, its own
        # block while active, last block afterwards.  No re-DMA while clamped,
        # and output blocks stay resident until written with real data.
        def idx(t):
            return (jnp.clip(t - start, 0, count - 1), 0)
        return idx

    in_specs = [pl.BlockSpec((tiles_n[i], f), make_idx(starts[i], n_tiles[i]))
                for i in range(num_planes)]
    # Stacked per-plane weight rows (P, 1, F) in VMEM; biases (P, 1) in SMEM.
    in_specs.append(pl.BlockSpec((num_planes, 1, f), lambda t: (0, 0, 0)))
    in_specs.append(pl.BlockSpec((num_planes, 1), lambda t: (0, 0),
                                 memory_space=pltpu.MemorySpace.SMEM))
    out_specs = tuple(pl.BlockSpec((tiles_n[i], 1), make_idx(starts[i], n_tiles[i]))
                      for i in range(num_planes))
    out_shape = tuple(jax.ShapeDtypeStruct((n_per_plane[i], 1), jnp.float32)
                      for i in range(num_planes))

    def kernel(*refs):
        x_refs = refs[:num_planes]
        w_ref = refs[num_planes]
        b_ref = refs[num_planes + 1]
        o_refs = refs[num_planes + 2:]
        t = pl.program_id(0)
        for i in range(num_planes):
            start, count = starts[i], n_tiles[i]

            @pl.when(jnp.logical_and(t >= start, t < start + count))
            def _(i=i):
                xv = x_refs[i][...].astype(jnp.float32)      # (tile, F)
                wv = w_ref[i].astype(jnp.float32)            # (1, F), broadcast
                # VPU multiply + lane (XLU) reduce over F; f32 accumulate.
                logits = jnp.sum(xv * wv, axis=1, keepdims=True) + b_ref[i, 0]
                o_refs[i][...] = jax.nn.sigmoid(logits).astype(o_refs[i].dtype)

    # Explicit VMEM request from the lane-padded footprint (+ headroom),
    # kept <= 32 MiB so it is safe under v7x's 64 MiB physical VMEM.
    need = sum(2 * (tiles_n[i] * f_pad * dtype.itemsize + tiles_n[i] * 128 * 4)
               for i in range(num_planes))
    need += 2 * num_planes * 8 * f_pad * 4 + (1 << 20)
    vmem_limit = int(min(need + (4 << 20), 32 << 20))
    vmem_limit = int(max(vmem_limit, need + (1 << 20)))

    call = pl.pallas_call(
        kernel,
        out_shape=out_shape,
        grid_spec=pltpu.PrefetchScalarGridSpec(
            num_scalar_prefetch=0,
            grid=(total_steps,),
            in_specs=in_specs,
            out_specs=out_specs,
        ),
        compiler_params=pltpu.CompilerParams(
            dimension_semantics=("arbitrary",),
            vmem_limit_bytes=vmem_limit),
    )

    def run(flats, w, b):
        outs = call(*flats, w, b)
        return tuple(o[:, 0] for o in outs)           # (N_p,) per plane

    return jax.jit(run)


class InstanceDecoderPallas:
    """JAX/Pallas equivalent of nugraph InstanceDecoder.forward."""

    def __init__(self, node_features, planes, classes, key):
        self.planes = list(planes)
        self.num_features = len(classes) * node_features
        # Deterministic synthetic init (PyTorch Linear-style uniform bound).
        bound = 1.0 / math.sqrt(self.num_features)
        ws, bs = [], []
        for i, _ in enumerate(self.planes):
            kw, kb = jax.random.split(jax.random.fold_in(key, i))
            ws.append(jax.random.uniform(kw, (self.num_features,), jnp.float32,
                                         minval=-bound, maxval=bound))
            bs.append(jax.random.uniform(kb, (), jnp.float32,
                                         minval=-bound, maxval=bound))
        self.w = jnp.stack(ws, axis=0)[:, None, :]     # (P, 1, F)
        self.b = jnp.stack(bs, axis=0)[:, None]        # (P, 1)

    def forward(self, x):
        flats, ns = [], []
        for pn in self.planes:
            xp = x[pn]
            xf = xp.reshape(xp.shape[0], -1)           # free contiguous reshape
            assert xf.shape[1] == self.num_features
            flats.append(xf)
            ns.append(int(xf.shape[0]))
        dtypes = {str(f.dtype) for f in flats}
        assert len(dtypes) == 1, "all planes must share an activation dtype"
        fn = _build_forward(tuple(ns), self.num_features, dtypes.pop())
        probs = fn(tuple(flats), self.w, self.b)
        return {"x_instance": {pn: probs[i] for i, pn in enumerate(self.planes)}}


if __name__ == "__main__":
    key = jax.random.PRNGKey(0)

    planes = ["u", "v", "y"]
    classes = ["c0", "c1", "c2", "c3"]   # len(classes) = 4
    node_features = 8                    # num_features = 32
    n_nodes = {"u": 16, "v": 32, "y": 48}   # skewed per-plane node counts

    decoder = InstanceDecoderPallas(node_features, planes, classes,
                                    jax.random.fold_in(key, 123))

    # Inputs: per-plane node embeddings of shape [N_p, len(classes), node_features]
    x = {}
    for i, p in enumerate(planes):
        kx = jax.random.fold_in(key, 1000 + i)
        x[p] = jax.random.normal(kx, (n_nodes[p], len(classes), node_features),
                                 jnp.float32)

    result = decoder.forward(x)
    jax.block_until_ready(result)

    # Sanity check against a plain-JAX reference.
    for i, p in enumerate(planes):
        w = decoder.w[i, 0]                    # (F,)
        b = decoder.b[i, 0]                    # scalar
        ref = jax.nn.sigmoid(x[p].reshape(n_nodes[p], -1) @ w + b)   # (N_p,)
        out = result["x_instance"][p]
        assert out.shape == (n_nodes[p],), (p, out.shape)
        assert jnp.allclose(out, ref, atol=1e-5), (
            p, float(jnp.max(jnp.abs(out - ref))))

    print("KERNEL_OK")
</pallas_src>

<mosaic_0001>
module attributes {stable_mosaic.version = 11 : i64} {
  func.func @kernel(%arg0: i32, %arg1: memref<16x32xf32, #tpu.memory_space<vmem>>, %arg2: memref<32x32xf32, #tpu.memory_space<vmem>>, %arg3: memref<48x32xf32, #tpu.memory_space<vmem>>, %arg4: memref<3x1x32xf32, #tpu.memory_space<vmem>>, %arg5: memref<3x1xf32, #tpu.memory_space<smem>>, %arg6: memref<16x1xf32, #tpu.memory_space<vmem>>, %arg7: memref<32x1xf32, #tpu.memory_space<vmem>>, %arg8: memref<48x1xf32, #tpu.memory_space<vmem>>) attributes {dimension_semantics = [#tpu.dimension_semantics<arbitrary>], iteration_bounds = array<i64: 3>, scalar_prefetch = 0 : i64, scratch_operands = 0 : i64, tpu.core_type = #tpu.core_type<tc>, window_params = [{transform_indices = @transform_0, window_bounds = array<i64: 16, 32>}, {transform_indices = @transform_1, window_bounds = array<i64: 32, 32>}, {transform_indices = @transform_2, window_bounds = array<i64: 48, 32>}, {pipeline_mode = #tpu.pipeline_mode<synchronous>, transform_indices = @transform_3, window_bounds = array<i64: 3, 1, 32>}, {transform_indices = @transform_4, window_bounds = array<i64: 3, 1>}, {transform_indices = @transform_5, window_bounds = array<i64: 16, 1>}, {transform_indices = @transform_6, window_bounds = array<i64: 32, 1>}, {transform_indices = @transform_7, window_bounds = array<i64: 48, 1>}]} {
    %c0_i32 = arith.constant 0 : i32
    %0 = arith.cmpi sge, %arg0, %c0_i32 : i32
    %c1_i32 = arith.constant 1 : i32
    %1 = arith.cmpi slt, %arg0, %c1_i32 : i32
    %2 = arith.andi %0, %1 : i1
    %3 = arith.extui %2 : i1 to i32
    %c0_i32_0 = arith.constant 0 : i32
    %4 = arith.cmpi ne, %3, %c0_i32_0 : i32
    scf.if %4 {
      %c0 = arith.constant 0 : index
      %c0_5 = arith.constant 0 : index
      %15 = vector.load %arg1[%c0, %c0_5] : memref<16x32xf32, #tpu.memory_space<vmem>>, vector<16x32xf32>
      %c0_6 = arith.constant 0 : index
      %c0_7 = arith.constant 0 : index
      %c0_8 = arith.constant 0 : index
      %16 = vector.load %arg4[%c0_6, %c0_7, %c0_8] : memref<3x1x32xf32, #tpu.memory_space<vmem>>, vector<1x1x32xf32>
      %17 = vector.shape_cast %16 : vector<1x1x32xf32> to vector<1x32xf32>
      %18 = vector.broadcast %17 : vector<1x32xf32> to vector<16x32xf32>
      %19 = arith.mulf %15, %18 : vector<16x32xf32>
      %cst = arith.constant dense<0.000000e+00> : vector<16xf32>
      %20 = vector.multi_reduction <add>, %19, %cst [1] : vector<16x32xf32> to vector<16xf32>
      %21 = vector.shape_cast %20 : vector<16xf32> to vector<16x1xf32>
      %c0_9 = arith.constant 0 : index
      %c0_10 = arith.constant 0 : index
      %22 = memref.load %arg5[%c0_9, %c0_10] : memref<3x1xf32, #tpu.memory_space<smem>>
      %23 = vector.broadcast %22 : f32 to vector<16x1xf32>
      %24 = arith.addf %21, %23 : vector<16x1xf32>
      %25 = arith.negf %24 : vector<16x1xf32>
      %26 = math.exp %25 : vector<16x1xf32>
      %cst_11 = arith.constant 1.000000e+00 : f32
      %27 = vector.broadcast %cst_11 : f32 to vector<16x1xf32>
      %28 = arith.addf %27, %26 : vector<16x1xf32>
      %29 = arith.divf %27, %28 : vector<16x1xf32>
      %c0_12 = arith.constant 0 : index
      %c0_13 = arith.constant 0 : index
      %30 = vector.load %arg6[%c0_12, %c0_13] : memref<16x1xf32, #tpu.memory_space<vmem>>, vector<16x1xf32>
      tpu.vector_store %arg6[%c0_12, %c0_13], %29 {strides = array<i32>} : memref<16x1xf32, #tpu.memory_space<vmem>>, vector<16x1xf32>,
    } else {
    }
    %c1_i32_1 = arith.constant 1 : i32
    %5 = arith.cmpi sge, %arg0, %c1_i32_1 : i32
    %c2_i32 = arith.constant 2 : i32
    %6 = arith.cmpi slt, %arg0, %c2_i32 : i32
    %7 = arith.andi %5, %6 : i1
    %8 = arith.extui %7 : i1 to i32
    %c0_i32_2 = arith.constant 0 : i32
    %9 = arith.cmpi ne, %8, %c0_i32_2 : i32
    scf.if %9 {
      %c0 = arith.constant 0 : index
      %c0_5 = arith.constant 0 : index
      %15 = vector.load %arg2[%c0, %c0_5] : memref<32x32xf32, #tpu.memory_space<vmem>>, vector<32x32xf32>
      %c1 = arith.constant 1 : index
      %c0_6 = arith.constant 0 : index
      %c0_7 = arith.constant 0 : index
      %16 = vector.load %arg4[%c1, %c0_6, %c0_7] : memref<3x1x32xf32, #tpu.memory_space<vmem>>, vector<1x1x32xf32>
      %17 = vector.shape_cast %16 : vector<1x1x32xf32> to vector<1x32xf32>
      %18 = vector.broadcast %17 : vector<1x32xf32> to vector<32x32xf32>
      %19 = arith.mulf %15, %18 : vector<32x32xf32>
      %cst = arith.constant dense<0.000000e+00> : vector<32xf32>
      %20 = vector.multi_reduction <add>, %19, %cst [1] : vector<32x32xf32> to vector<32xf32>
      %21 = vector.shape_cast %20 : vector<32xf32> to vector<32x1xf32>
      %c1_8 = arith.constant 1 : index
      %c0_9 = arith.constant 0 : index
      %22 = memref.load %arg5[%c1_8, %c0_9] : memref<3x1xf32, #tpu.memory_space<smem>>
      %23 = vector.broadcast %22 : f32 to vector<32x1xf32>
      %24 = arith.addf %21, %23 : vector<32x1xf32>
      %25 = arith.negf %24 : vector<32x1xf32>
      %26 = math.exp %25 : vector<32x1xf32>
      %cst_10 = arith.constant 1.000000e+00 : f32
      %27 = vector.broadcast %cst_10 : f32 to vector<32x1xf32>
      %28 = arith.addf %27, %26 : vector<32x1xf32>
      %29 = arith.divf %27, %28 : vector<32x1xf32>
      %c0_11 = arith.constant 0 : index
      %c0_12 = arith.constant 0 : index
      %30 = vector.load %arg7[%c0_11, %c0_12] : memref<32x1xf32, #tpu.memory_space<vmem>>, vector<32x1xf32>
      tpu.vector_store %arg7[%c0_11, %c0_12], %29 {strides = array<i32>} : memref<32x1xf32, #tpu.memory_space<vmem>>, vector<32x1xf32>,
    } else {
    }
    %c2_i32_3 = arith.constant 2 : i32
    %10 = arith.cmpi sge, %arg0, %c2_i32_3 : i32
    %c3_i32 = arith.constant 3 : i32
    %11 = arith.cmpi slt, %arg0, %c3_i32 : i32
    %12 = arith.andi %10, %11 : i1
    %13 = arith.extui %12 : i1 to i32
    %c0_i32_4 = arith.constant 0 : i32
    %14 = arith.cmpi ne, %13, %c0_i32_4 : i32
    scf.if %14 {
      %c0 = arith.constant 0 : index
      %c0_5 = arith.constant 0 : index
      %15 = vector.load %arg3[%c0, %c0_5] : memref<48x32xf32, #tpu.memory_space<vmem>>, vector<48x32xf32>
      %c2 = arith.constant 2 : index
      %c0_6 = arith.constant 0 : index
      %c0_7 = arith.constant 0 : index
      %16 = vector.load %arg4[%c2, %c0_6, %c0_7] : memref<3x1x32xf32, #tpu.memory_space<vmem>>, vector<1x1x32xf32>
      %17 = vector.shape_cast %16 : vector<1x1x32xf32> to vector<1x32xf32>
      %18 = vector.broadcast %17 : vector<1x32xf32> to vector<48x32xf32>
      %19 = arith.mulf %15, %18 : vector<48x32xf32>
      %cst = arith.constant dense<0.000000e+00> : vector<48xf32>
      %20 = vector.multi_reduction <add>, %19, %cst [1] : vector<48x32xf32> to vector<48xf32>
      %21 = vector.shape_cast %20 : vector<48xf32> to vector<48x1xf32>
      %c2_8 = arith.constant 2 : index
      %c0_9 = arith.constant 0 : index
      %22 = memref.load %arg5[%c2_8, %c0_9] : memref<3x1xf32, #tpu.memory_space<smem>>
      %23 = vector.broadcast %22 : f32 to vector<48x1xf32>
      %24 = arith.addf %21, %23 : vector<48x1xf32>
      %25 = arith.negf %24 : vector<48x1xf32>
      %26 = math.exp %25 : vector<48x1xf32>
      %cst_10 = arith.constant 1.000000e+00 : f32
      %27 = vector.broadcast %cst_10 : f32 to vector<48x1xf32>
      %28 = arith.addf %27, %26 : vector<48x1xf32>
      %29 = arith.divf %27, %28 : vector<48x1xf32>
      %c0_11 = arith.constant 0 : index
      %c0_12 = arith.constant 0 : index
      %30 = vector.load %arg8[%c0_11, %c0_12] : memref<48x1xf32, #tpu.memory_space<vmem>>, vector<48x1xf32>
      tpu.vector_store %arg8[%c0_11, %c0_12], %29 {strides = array<i32>} : memref<48x1xf32, #tpu.memory_space<vmem>>, vector<48x1xf32>,
    } else {
    }
    return
  }
  func.func @transform_0(%arg0: i32) -> (i32, i32) {
    %c0_i32 = arith.constant 0 : i32
    %0 = arith.subi %arg0, %c0_i32 : i32
    %c0_i32_0 = arith.constant 0 : i32
    %c0_i32_1 = arith.constant 0 : i32
    %1 = arith.maxsi %c0_i32_0, %0 : i32
    %2 = arith.minsi %c0_i32_1, %1 : i32
    %c0_i32_2 = arith.constant 0 : i32
    %c0_i32_3 = arith.constant 0 : i32
    return %2, %c0_i32_2 : i32, i32
  }
  func.func @transform_1(%arg0: i32) -> (i32, i32) {
    %c1_i32 = arith.constant 1 : i32
    %0 = arith.subi %arg0, %c1_i32 : i32
    %c0_i32 = arith.constant 0 : i32
    %c0_i32_0 = arith.constant 0 : i32
    %1 = arith.maxsi %c0_i32, %0 : i32
    %2 = arith.minsi %c0_i32_0, %1 : i32
    %c0_i32_1 = arith.constant 0 : i32
    %c0_i32_2 = arith.constant 0 : i32
    return %2, %c0_i32_1 : i32, i32
  }
  func.func @transform_2(%arg0: i32) -> (i32, i32) {
    %c2_i32 = arith.constant 2 : i32
    %0 = arith.subi %arg0, %c2_i32 : i32
    %c0_i32 = arith.constant 0 : i32
    %c0_i32_0 = arith.constant 0 : i32
    %1 = arith.maxsi %c0_i32, %0 : i32
    %2 = arith.minsi %c0_i32_0, %1 : i32
    %c0_i32_1 = arith.constant 0 : i32
    %c0_i32_2 = arith.constant 0 : i32
    return %2, %c0_i32_1 : i32, i32
  }
  func.func @transform_3(%arg0: i32) -> (i32, i32, i32) {
    %c0_i32 = arith.constant 0 : i32
    %c0_i32_0 = arith.constant 0 : i32
    %c0_i32_1 = arith.constant 0 : i32
    %c0_i32_2 = arith.constant 0 : i32
    return %c0_i32, %c0_i32_0, %c0_i32_1 : i32, i32, i32
  }
  func.func @transform_4(%arg0: i32) -> (i32, i32) {
    %c0_i32 = arith.constant 0 : i32
    %c0_i32_0 = arith.constant 0 : i32
    %c0_i32_1 = arith.constant 0 : i32
    return %c0_i32, %c0_i32_0 : i32, i32
  }
  func.func @transform_5(%arg0: i32) -> (i32, i32) {
    %c0_i32 = arith.constant 0 : i32
    %0 = arith.subi %arg0, %c0_i32 : i32
    %c0_i32_0 = arith.constant 0 : i32
    %c0_i32_1 = arith.constant 0 : i32
    %1 = arith.maxsi %c0_i32_0, %0 : i32
    %2 = arith.minsi %c0_i32_1, %1 : i32
    %c0_i32_2 = arith.constant 0 : i32
    %c0_i32_3 = arith.constant 0 : i32
    return %2, %c0_i32_2 : i32, i32
  }
  func.func @transform_6(%arg0: i32) -> (i32, i32) {
    %c1_i32 = arith.constant 1 : i32
    %0 = arith.subi %arg0, %c1_i32 : i32
    %c0_i32 = arith.constant 0 : i32
    %c0_i32_0 = arith.constant 0 : i32
    %1 = arith.maxsi %c0_i32, %0 : i32
    %2 = arith.minsi %c0_i32_0, %1 : i32
    %c0_i32_1 = arith.constant 0 : i32
    %c0_i32_2 = arith.constant 0 : i32
    return %2, %c0_i32_1 : i32, i32
  }
  func.func @transform_7(%arg0: i32) -> (i32, i32) {
    %c2_i32 = arith.constant 2 : i32
    %0 = arith.subi %arg0, %c2_i32 : i32
    %c0_i32 = arith.constant 0 : i32
    %c0_i32_0 = arith.constant 0 : i32
    %1 = arith.maxsi %c0_i32, %0 : i32
    %2 = arith.minsi %c0_i32_0, %1 : i32
    %c0_i32_1 = arith.constant 0 : i32
    %c0_i32_2 = arith.constant 0 : i32
    return %2, %c0_i32_1 : i32, i32
  }
}

</mosaic_0001>

<bundles_post_ra>
// kernel: run.1
= control target key start
LH: loop header
LB: loop body
LE: loop exit
PB: predicated region body
PF: predicated region fallthrough
CT: control target
= control target key end

     0   :  { %13 = vsyncpa [#allocation3], 0  ;;  %s1368_s24 = smov 0   ;;  %s1519_s0 = inlined_call_operand.vmem [shape: f32[16,32], index: 0, kind: input, shape index: {}]   ;;  %s1520_s1 = inlined_call_operand.vmem [shape: f32[32,32], index: 1, kind: input, shape index: {}]   ;;  %s1521_s2 = inlined_call_operand.vmem [shape: f32[48,32], index: 2, kind: input, shape index: {}]   ;;  %s1522_s3 = inlined_call_operand.vmem [shape: f32[3,1,32], index: 3, kind: input, shape index: {}]   ;;  %s1523_s4 = inlined_call_operand.vmem [shape: f32[3,1], index: 4, kind: input, shape index: {}]   ;;  %s1524_s5 = inlined_call_operand.vmem [shape: f32[16,1], index: 5, kind: output, shape index: {0}]   ;;  %s1525_s6 = inlined_call_operand.vmem [shape: f32[32,1], index: 6, kind: output, shape index: {1}]   ;;  %s1526_s7 = inlined_call_operand.vmem [shape: f32[48,1], index: 7, kind: output, shape index: {2}]  }
   0x1 LB: > { %s1374_s25 = sadd.s32 4294967295, %s1325_s24   ;;  %p1163_p0 = scmp.ge.s32.totalorder %s1325_s24, 1  ;;  %s1325_s24 = sphi %s1368_s24, %s19_s24  }
   0x2   : > { %p278_p1 = scmp.lt.s32.totalorder %s1325_s24, 4  ;;  %s293_s28 = sshll.u32 %s1523_s4, 4  ;;  %s294_s28 = int_to_ptr.vmem [resolvable:$true] %s293_s28 }
   0x3   : > { %p1238_p3 = scmp.eq.s32.totalorder %s1374_s25, 0  ;;  %s1327_s29 = smov [#allocation2]  }
   0x4   : > { %p279_p2 = pnand %p1163_p0, %p278_p1 }
   0x6   : > { %p1234_p4 = pneg %p279_p2  ;;  %361 = sbr.rel (%p279_p2) target bundleno = 527 (0x20f), region = 40 }
   0x8   : > { %p1235_p5 = pnand %p1238_p3, %p1234_p4 }
   0xa   : > { %1237 = dma.vmem_to_smem (!%p1235_p5), %s294_s28, 64, %s1327_s29, [#allocation3]  }
   0xb   : > { %1320 = dma.done.wait (%p1238_p3), [#allocation3], 64  }
   0xc   : > { %1322 = vsyncadd (%p1238_p3), [#allocation3], 4294967232 }
   0xd   : > { %368 = sfence }
   0xe   : > { %p535_p6 = scmp.ge.s32.totalorder %s1374_s25, 0  ;;  %p536_p7 = scmp.lt.s32.totalorder %s1374_s25, 1 }
  0x10   : > { %p537_p8 = pnand %p536_p7, %p535_p6 }
  0x11   : > { %s556_s13 = sld [smem:[#allocation2]] (!%p537_p8) }
  0x12   : > { %540 = sbr.rel (%p537_p8) target bundleno = 183 (0xb7), region = 48 }
  0x17   : > { %v541_v0 = vld [vmem:[%s1519_s0] sm:$0xff]  ;;  %vm549_vm0 = vcmask 261120   ;;  %v542_v3 = vld [vmem:[%s1519_s0 + $0x8] sm:$0xff]  ;;  %v557_v7 = vstv %s556_s13  ;;  %vm598_vm3 = vcmask 7168  }
  0x18   : > { %v1249_v1 = vld [vmem:[%s1522_s3] ss:$0 sm:$0xff] }
  0x19   : > { %v547_v2 = vmul.f32 %v1249_v1, %v541_v0  ;;  %v548_v5 = vmul.f32 %v1249_v1, %v542_v3 }
  0x1b   : > { %v550_v4 = vsel %vm549_vm0, %v547_v2, 0.0  ;;  %v553_v6 = vsel %vm549_vm0, %v548_v5, 0.0 }
  0x1c   : > { %551 = vadd.xlane.f32.xlu0 %v550_v4 }
  0x24   : > { %554 = vadd.xlane.f32.xlu0 %v553_v6 }
  0x8f   : > { %v552_v8 = vpop.xlane.xlu0 %551 }
  0x90   : > { %v558_v9 = vadd.f32 %v557_v7, %v552_v8 }
  0x92   : > { %v1212_v10 = vmul.f32 -1.442695, %v558_v9 }
  0x94   : > { %1250 = vpow2.f32 %v1212_v10 }
  0x97   : > { %v555_v11 = vpop.xlane.xlu0 %554 }
  0x98   : > { %v559_v12 = vadd.f32 %v557_v7, %v555_v11 }
  0x9a   : > { %v1251_v13 = vpop.eup %1250  ;;  %v1213_v14 = vmul.f32 -1.442695, %v559_v12 }
  0x9b   : > { %v566_v15 = vadd.f32 1.0, %v1251_v13 }
  0x9c   : > { %1252 = vpow2.f32 %v1213_v14 }
  0x9d   : > { %1254 = vrcp.f32 %v566_v15  ;;  %v579_v21 = vand.u32 2147483648, %v566_v15  ;;  %v577_v23 = vand.u32 2147483647, %v566_v15  ;;  %vm573_vm2 = vweird.f32 %v566_v15 }
  0x9f   : > { %v580_v26 = vor.u32 1.1754944e-38, %v579_v21  ;;  %vm578_vm5 = vcmp.eq.f32.partialorder %v577_v23, 8.507059e+37 }
  0xa2   : > { %v1253_v16 = vpop.eup %1252 }
  0xa3   : > { %v1255_v17 = vpop.eup %1254  ;;  %v567_v18 = vadd.f32 1.0, %v1253_v16 }
  0xa4   : > { %v569_v19 = vmul.f32 %v1255_v17, %v566_v15  ;;  %vm574_vm1 = vweird.f32 %v1255_v17 }
  0xa5   : > { %1256 = vrcp.f32 %v567_v18  ;;  %vm575_vm4 = vmor %vm573_vm2, %vm574_vm1  ;;  %v594_v31 = vand.u32 2147483648, %v567_v18  ;;  %v592_v33 = vand.u32 2147483647, %v567_v18  ;;  %vm588_vm7 = vweird.f32 %v567_v18 }
  0xa6   : > { %v570_v20 = vsub.f32 1.0, %v569_v19 }
  0xa7   : > { %v595_v35 = vor.u32 1.1754944e-38, %v594_v31  ;;  %vm593_vm9 = vcmp.eq.f32.partialorder %v592_v33, 8.507059e+37 }
  0xa8   : > { %v571_v22 = vmul.f32 %v1255_v17, %v570_v20 }
  0xaa   : > { %v572_v24 = vadd.f32 %v1255_v17, %v571_v22 }
  0xab   : > { %v1257_v25 = vpop.eup %1256 }
  0xac   : > { %v576_v27 = vsel %vm575_vm4, %v1255_v17, %v572_v24  ;;  %v584_v28 = vmul.f32 %v1257_v25, %v567_v18  ;;  %vm589_vm6 = vweird.f32 %v1257_v25 }
  0xad   : > { %v581_v29 = vsel %vm578_vm5, %v580_v26, %v576_v27  ;;  %vm590_vm8 = vmor %vm588_vm7, %vm589_vm6 }
  0xae   : > { %599 = vst.msk [vmem:[%s1524_s5] sm:$0xff] %vm598_vm3, %v581_v29  ;;  %v585_v30 = vsub.f32 1.0, %v584_v28 }
  0xb0   : > { %v586_v32 = vmul.f32 %v1257_v25, %v585_v30 }
  0xb2   : > { %v587_v34 = vadd.f32 %v1257_v25, %v586_v32 }
  0xb4   : > { %v591_v36 = vsel %vm590_vm8, %v1257_v25, %v587_v34 }
  0xb5   : > { %v596_v37 = vsel %vm593_vm9, %v595_v35, %v591_v36 }
  0xb6   : > { %600 = vst.msk [vmem:[%s1524_s5 + $0x8] sm:$0xff] %vm598_vm3, %v596_v37 }
  0xb7 PF: > { %p601_p9 = scmp.ge.s32.totalorder %s1374_s25, 1  ;;  %p602_p10 = scmp.lt.s32.totalorder %s1374_s25, 2 }
  0xb9   : > { %p603_p11 = pnand %p602_p10, %p601_p9 }
  0xba   : > { %s1215_s30 = sld [smem:[#allocation2 + $0x80]] (!%p603_p11) }
  0xbb   : > { %606 = sbr.rel (%p603_p11) target bundleno = 354 (0x162), region = 52 }
  0xc0   : > { %v609_v38 = vld [vmem:[%s1520_s1 + $0x10] sm:$0xff]  ;;  %v1258_v39 = vld [vmem:[%s1522_s3 + $0x1] ss:$0 sm:$0xff]  ;;  %vm620_vm10 = vcmask 261120   ;;  %v610_v43 = vld [vmem:[%s1520_s1 + $0x18] sm:$0xff]  ;;  %v634_v51 = vstv %s1215_s30  ;;  %vm715_vm14 = vcmask 7168  }
  0xc1   : > { %v607_v40 = vld [vmem:[%s1520_s1] sm:$0xff]  ;;  %v618_v41 = vmul.f32 %v1258_v39, %v609_v38  ;;  %v608_v44 = vld [vmem:[%s1520_s1 + $0x8] sm:$0xff]  ;;  %v619_v47 = vmul.f32 %v1258_v39, %v610_v43 }
  0xc2   : > { %v616_v42 = vmul.f32 %v1258_v39, %v607_v40  ;;  %v617_v48 = vmul.f32 %v1258_v39, %v608_v44 }
  0xc3   : > { %v627_v45 = vsel %vm620_vm10, %v618_v41, 0.0  ;;  %v630_v49 = vsel %vm620_vm10, %v619_v47, 0.0 }
  0xc4   : > { %v621_v46 = vsel %vm620_vm10, %v616_v42, 0.0  ;;  %628 = vadd.xlane.f32.xlu1 %v627_v45  ;;  %v624_v50 = vsel %vm620_vm10, %v617_v48, 0.0 }
  0xc5   : > { %622 = vadd.xlane.f32.xlu0 %v621_v46 }
  0xcc   : > { %631 = vadd.xlane.f32.xlu1 %v630_v49 }
  0xcd   : > { %625 = vadd.xlane.f32.xlu0 %v624_v50 }
 0x137   : > { %v629_v52 = vpop.xlane.xlu1 %628 }
 0x138   : > { %v623_v53 = vpop.xlane.xlu0 %622  ;;  %v637_v54 = vadd.f32 %v634_v51, %v629_v52 }
 0x139   : > { %v635_v55 = vadd.f32 %v634_v51, %v623_v53 }
 0x13a   : > { %v1218_v56 = vmul.f32 -1.442695, %v637_v54 }
 0x13b   : > { %v1216_v57 = vmul.f32 -1.442695, %v635_v55 }
 0x13c   : > { %1259 = vpow2.f32 %v1218_v56 }
 0x13d   : > { %1261 = vpow2.f32 %v1216_v57 }
 0x13f   : > { %v632_v58 = vpop.xlane.xlu1 %631 }
 0x140   : > { %v626_v59 = vpop.xlane.xlu0 %625  ;;  %v638_v60 = vadd.f32 %v634_v51, %v632_v58 }
 0x141   : > { %v636_v61 = vadd.f32 %v634_v51, %v626_v59 }
 0x142   : > { %v1260_v62 = vpop.eup %1259  ;;  %v1219_v63 = vmul.f32 -1.442695, %v638_v60 }
 0x143   : > { %v1262_v0 = vpop.eup %1261  ;;  %v653_v1 = vadd.f32 1.0, %v1260_v62  ;;  %v1217_v2 = vmul.f32 -1.442695, %v636_v61 }
 0x144   : > { %v651_v3 = vadd.f32 1.0, %v1262_v0  ;;  %1263 = vpow2.f32 %v1219_v63 }
 0x145   : > { %1265 = vrcp.f32 %v653_v1  ;;  %v694_v13 = vand.u32 2147483647, %v653_v1  ;;  %v696_v14 = vand.u32 2147483648, %v653_v1  ;;  %vm690_vm13 = vweird.f32 %v653_v1 }
 0x146   : > { %1267 = vrcp.f32 %v651_v3  ;;  %v666_v17 = vand.u32 2147483648, %v651_v3  ;;  %v664_v19 = vand.u32 2147483647, %v651_v3  ;;  %vm660_vm0 = vweird.f32 %v651_v3 }
 0x147   : > { %1269 = vpow2.f32 %v1217_v2  ;;  %v697_v22 = vor.u32 1.1754944e-38, %v696_v14  ;;  %vm695_vm1 = vcmp.eq.f32.partialorder %v694_v13, 8.507059e+37 }
 0x148   : > { %v667_v25 = vor.u32 1.1754944e-38, %v666_v17  ;;  %vm665_vm3 = vcmp.eq.f32.partialorder %v664_v19, 8.507059e+37 }
 0x14a   : > { %v1264_v4 = vpop.eup %1263 }
 0x14b   : > { %v1266_v5 = vpop.eup %1265  ;;  %v654_v6 = vadd.f32 1.0, %v1264_v4 }
 0x14c   : > { %v1268_v7 = vpop.eup %1267  ;;  %v686_v8 = vmul.f32 %v1266_v5, %v653_v1  ;;  %vm691_vm11 = vweird.f32 %v1266_v5 }
 0x14d   : > { %v1270_v9 = vpop.eup %1269  ;;  %v656_v10 = vmul.f32 %v1268_v7, %v651_v3  ;;  %1271 = vrcp.f32 %v654_v6  ;;  %vm661_vm12 = vweird.f32 %v1268_v7  ;;  %vm692_vm15 = vmor %vm690_vm13, %vm691_vm11  ;;  %v711_v32 = vand.u32 2147483648, %v654_v6 }
 0x14e   : > { %v687_v11 = vsub.f32 1.0, %v686_v8  ;;  %v652_v12 = vadd.f32 1.0, %v1270_v9  ;;  %vm662_vm2 = vmor %vm660_vm0, %vm661_vm12  ;;  %v709_v35 = vand.u32 2147483647, %v654_v6  ;;  %vm705_vm5 = vweird.f32 %v654_v6 }
 0x14f   : > { %v657_v15 = vsub.f32 1.0, %v656_v10  ;;  %v712_v39 = vor.u32 1.1754944e-38, %v711_v32 }
 0x150   : > { %v688_v16 = vmul.f32 %v1266_v5, %v687_v11  ;;  %1273 = vrcp.f32 %v652_v12  ;;  %v681_v38 = vand.u32 2147483648, %v652_v12  ;;  %v679_v41 = vand.u32 2147483647, %v652_v12 }
 0x151   : > { %v658_v18 = vmul.f32 %v1268_v7, %v657_v15  ;;  %vm710_vm8 = vcmp.eq.f32.partialorder %v709_v35, 8.507059e+37  ;;  %vm675_vm9 = vweird.f32 %v652_v12 }
 0x152   : > { %v689_v20 = vadd.f32 %v1266_v5, %v688_v16  ;;  %v682_v45 = vor.u32 1.1754944e-38, %v681_v38  ;;  %vm680_vm11 = vcmp.eq.f32.partialorder %v679_v41, 8.507059e+37 }
 0x153   : > { %v1272_v21 = vpop.eup %1271  ;;  %v659_v23 = vadd.f32 %v1268_v7, %v658_v18 }
 0x154   : > { %v693_v24 = vsel %vm692_vm15, %v1266_v5, %v689_v20  ;;  %v701_v26 = vmul.f32 %v1272_v21, %v654_v6  ;;  %vm706_vm4 = vweird.f32 %v1272_v21 }
 0x155   : > { %v698_v27 = vsel %vm695_vm1, %v697_v22, %v693_v24  ;;  %v663_v28 = vsel %vm662_vm2, %v1268_v7, %v659_v23  ;;  %vm707_vm6 = vmor %vm705_vm5, %vm706_vm4 }
 0x156   : > { %v1274_v29 = vpop.eup %1273  ;;  %718 = vst.msk [vmem:[%s1525_s6 + $0x10] sm:$0xff] %vm715_vm14, %v698_v27  ;;  %v668_v30 = vsel %vm665_vm3, %v667_v25, %v663_v28  ;;  %v702_v31 = vsub.f32 1.0, %v701_v26 }
 0x157   : > { %716 = vst.msk [vmem:[%s1525_s6] sm:$0xff] %vm715_vm14, %v668_v30  ;;  %v671_v33 = vmul.f32 %v1274_v29, %v652_v12  ;;  %vm676_vm7 = vweird.f32 %v1274_v29 }
 0x158   : > { %v703_v34 = vmul.f32 %v1272_v21, %v702_v31  ;;  %vm677_vm10 = vmor %vm675_vm9, %vm676_vm7 }
 0x159   : > { %v672_v36 = vsub.f32 1.0, %v671_v33 }
 0x15a   : > { %v704_v37 = vadd.f32 %v1272_v21, %v703_v34 }
 0x15b   : > { %v673_v40 = vmul.f32 %v1274_v29, %v672_v36 }
 0x15c   : > { %v708_v42 = vsel %vm707_vm6, %v1272_v21, %v704_v37 }
 0x15d   : > { %v713_v43 = vsel %vm710_vm8, %v712_v39, %v708_v42  ;;  %v674_v44 = vadd.f32 %v1274_v29, %v673_v40 }
 0x15e   : > { %719 = vst.msk [vmem:[%s1525_s6 + $0x18] sm:$0xff] %vm715_vm14, %v713_v43 }
 0x15f   : > { %v678_v46 = vsel %vm677_vm10, %v1274_v29, %v674_v44 }
 0x160   : > { %v683_v47 = vsel %vm680_vm11, %v682_v45, %v678_v46 }
 0x161   : > { %717 = vst.msk [vmem:[%s1525_s6 + $0x8] sm:$0xff] %vm715_vm14, %v683_v47 }
 0x162 PF: > { %p720_p12 = scmp.ge.s32.totalorder %s1374_s25, 2  ;;  %p721_p13 = scmp.lt.s32.totalorder %s1374_s25, 3 }
 0x164   : > { %p722_p0 = pnand %p721_p13, %p720_p12 }
 0x165   : > { %s1221_s8 = sld [smem:[#allocation2 + $0x100]] (!%p722_p0) }
 0x166   : > { %725 = sbr.rel (%p722_p0) target bundleno = 527 (0x20f), region = 56 }
 0x16b   : > { %v730_v48 = vld [vmem:[%s1521_s2 + $0x20] sm:$0xff]  ;;  %vm743_vm12 = vcmask 261120   ;;  %v728_v50 = vld [vmem:[%s1521_s2 + $0x10] sm:$0xff]  ;;  %v731_v55 = vld [vmem:[%s1521_s2 + $0x28] sm:$0xff]  ;;  %v763_v3 = vstv %s1221_s8  ;;  %vm884_vm13 = vcmask 7168  }
 0x16c   : > { %v1275_v49 = vld [vmem:[%s1522_s3 + $0x2] ss:$0 sm:$0xff]  ;;  %v729_v56 = vld [vmem:[%s1521_s2 + $0x18] sm:$0xff]  ;;  %v727_v60 = vld [vmem:[%s1521_s2 + $0x8] sm:$0xff] }
 0x16d   : > { %v726_v51 = vld [vmem:[%s1521_s2] sm:$0xff]  ;;  %v741_v52 = vmul.f32 %v1275_v49, %v730_v48  ;;  %v739_v53 = vmul.f32 %v1275_v49, %v728_v50  ;;  %v742_v61 = vmul.f32 %v1275_v49, %v731_v55  ;;  %v740_v62 = vmul.f32 %v1275_v49, %v729_v56 }
 0x16e   : > { %v737_v54 = vmul.f32 %v1275_v49, %v726_v51  ;;  %v738_v63 = vmul.f32 %v1275_v49, %v727_v60 }
 0x16f   : > { %v756_v57 = vsel %vm743_vm12, %v741_v52, 0.0  ;;  %v750_v58 = vsel %vm743_vm12, %v739_v53, 0.0  ;;  %v759_v0 = vsel %vm743_vm12, %v742_v61, 0.0  ;;  %v753_v1 = vsel %vm743_vm12, %v740_v62, 0.0 }
 0x170   : > { %v744_v59 = vsel %vm743_vm12, %v737_v54, 0.0  ;;  %757 = vadd.xlane.f32.xlu2 %v756_v57  ;;  %751 = vadd.xlane.f32.xlu1 %v750_v58  ;;  %v747_v2 = vsel %vm743_vm12, %v738_v63, 0.0 }
 0x171   : > { %745 = vadd.xlane.f32.xlu0 %v744_v59 }
 0x178   : > { %760 = vadd.xlane.f32.xlu2 %v759_v0  ;;  %754 = vadd.xlane.f32.xlu1 %v753_v1 }
 0x179   : > { %748 = vadd.xlane.f32.xlu0 %v747_v2 }
 0x1e3   : > { %v758_v4 = vpop.xlane.xlu2 %757  ;;  %v752_v5 = vpop.xlane.xlu1 %751 }
 0x1e4   : > { %v768_v6 = vadd.f32 %v763_v3, %v758_v4  ;;  %v766_v7 = vadd.f32 %v763_v3, %v752_v5  ;;  %v746_v8 = vpop.xlane.xlu0 %745 }
 0x1e5   : > { %v764_v9 = vadd.f32 %v763_v3, %v746_v8 }
 0x1e6   : > { %v1226_v10 = vmul.f32 -1.442695, %v768_v6  ;;  %v1224_v11 = vmul.f32 -1.442695, %v766_v7 }
 0x1e7   : > { %v1222_v12 = vmul.f32 -1.442695, %v764_v9 }
 0x1e8   : > { %1276 = vpow2.f32 %v1226_v10 }
 0x1e9   : > { %1278 = vpow2.f32 %v1224_v11 }
 0x1ea   : > { %1280 = vpow2.f32 %v1222_v12 }
 0x1eb   : > { %v761_v13 = vpop.xlane.xlu2 %760  ;;  %v755_v14 = vpop.xlane.xlu1 %754 }
 0x1ec   : > { %v769_v15 = vadd.f32 %v763_v3, %v761_v13  ;;  %v767_v16 = vadd.f32 %v763_v3, %v755_v14  ;;  %v749_v17 = vpop.xlane.xlu0 %748 }
 0x1ed   : > { %v765_v18 = vadd.f32 %v763_v3, %v749_v17 }
 0x1ee   : > { %v1277_v19 = vpop.eup %1276  ;;  %v1227_v20 = vmul.f32 -1.442695, %v769_v15  ;;  %v1225_v23 = vmul.f32 -1.442695, %v767_v16 }
 0x1ef   : > { %v1279_v21 = vpop.eup %1278  ;;  %v792_v22 = vadd.f32 1.0, %v1277_v19  ;;  %v1223_v26 = vmul.f32 -1.442695, %v765_v18 }
 0x1f0   : > { %v1281_v24 = vpop.eup %1280  ;;  %v790_v25 = vadd.f32 1.0, %v1279_v21  ;;  %1282 = vpow2.f32 %v1227_v20 }
 0x1f1   : > { %1284 = vrcp.f32 %v792_v22  ;;  %v788_v27 = vadd.f32 1.0, %v1281_v24  ;;  %v863_v34 = vand.u32 2147483647, %v792_v22  ;;  %v865_v38 = vand.u32 2147483648, %v792_v22 }
 0x1f2   : > { %1286 = vrcp.f32 %v790_v25  ;;  %v835_v39 = vand.u32 2147483648, %v790_v25  ;;  %vm859_vm14 = vweird.f32 %v792_v22  ;;  %vm829_vm15 = vweird.f32 %v790_v25 }
 0x1f3   : > { %1288 = vpow2.f32 %v1225_v23  ;;  %v833_v45 = vand.u32 2147483647, %v790_v25  ;;  %vm1470_vm1 = vcmp.eq.f32.partialorder %v863_v34, 8.507059e+37  ;;  %v866_v50 = vor.u32 1.1754944e-38, %v865_v38 }
 0x1f4   : > { %1290 = vpow2.f32 %v1223_v26  ;;  %v836_v51 = vor.u32 1.1754944e-38, %v835_v39  ;;  %v803_v55 = vand.u32 2147483647, %v788_v27  ;;  %v805_v56 = vand.u32 2147483648, %v788_v27 }
 0x1f5   : > { %1292 = vrcp.f32 %v788_v27  ;;  %vm834_vm6 = vcmp.eq.f32.partialorder %v833_v45, 8.507059e+37  ;;  %vm799_vm7 = vweird.f32 %v788_v27 }
 0x1f6   : > { %v1283_v28 = vpop.eup %1282  ;;  %vm804_vm9 = vcmp.eq.f32.partialorder %v803_v55, 8.507059e+37  ;;  %v806_v2 = vor.u32 1.1754944e-38, %v805_v56 }
 0x1f7   : > { %v1285_v29 = vpop.eup %1284  ;;  %v1463_v30 = vadd.f32 1.0, %v1283_v28 }
 0x1f8   : > { %v1287_v31 = vpop.eup %1286  ;;  %v855_v32 = vmul.f32 %v1285_v29, %v792_v22  ;;  %vm860_vm0 = vweird.f32 %v1285_v29 }
 0x1f9   : > { %v1289_v33 = vpop.eup %1288  ;;  %v825_v35 = vmul.f32 %v1287_v31, %v790_v25  ;;  %1294 = vrcp.f32 %v1463_v30  ;;  %vm830_vm2 = vweird.f32 %v1287_v31  ;;  %vm861_vm3 = vmor %vm859_vm14, %vm860_vm0  ;;  %v878_v3 = vand.u32 2147483647, %v1463_v30 }
 0x1fa   : > { %v1291_v36 = vpop.eup %1290  ;;  %v856_v37 = vsub.f32 1.0, %v855_v32  ;;  %v1466_v40 = vadd.f32 1.0, %v1289_v33  ;;  %vm831_vm4 = vmor %vm829_vm15, %vm830_vm2  ;;  %v880_v4 = vand.u32 2147483648, %v1463_v30  ;;  %vm874_vm11 = vweird.f32 %v1463_v30 }
 0x1fb   : > { %v1293_v41 = vpop.eup %1292  ;;  %v826_v42 = vsub.f32 1.0, %v825_v35  ;;  %v1468_v43 = vadd.f32 1.0, %v1291_v36  ;;  %vm879_vm14 = vcmp.eq.f32.partialorder %v878_v3, 8.507059e+37 }
 0x1fc   : > { %v857_v44 = vmul.f32 %v1285_v29, %v856_v37  ;;  %v795_v46 = vmul.f32 %v1293_v41, %v788_v27  ;;  %1296 = vrcp.f32 %v1466_v40  ;;  %vm800_vm5 = vweird.f32 %v1293_v41 }
 0x1fd   : > { %v827_v48 = vmul.f32 %v1287_v31, %v826_v42  ;;  %1298 = vrcp.f32 %v1468_v43  ;;  %vm801_vm8 = vmor %vm799_vm7, %vm800_vm5  ;;  %v881_v13 = vor.u32 1.1754944e-38, %v880_v4  ;;  %v848_v14 = vand.u32 2147483647, %v1466_v40 }
 0x1fe   : > { %v858_v49 = vadd.f32 %v1285_v29, %v857_v44  ;;  %v796_v52 = vsub.f32 1.0, %v795_v46  ;;  %v850_v15 = vand.u32 2147483648, %v1466_v40  ;;  %vm844_vm0 = vweird.f32 %v1466_v40 }
 0x1ff   : > { %v1295_v53 = vpop.eup %1294  ;;  %v828_v54 = vadd.f32 %v1287_v31, %v827_v48  ;;  %v820_v20 = vand.u32 2147483648, %v1468_v43  ;;  %v818_v23 = vand.u32 2147483647, %v1468_v43 }
 0x200   : > { %v862_v57 = vsel %vm861_vm3, %v1285_v29, %v858_v49  ;;  %v797_v58 = vmul.f32 %v1293_v41, %v796_v52  ;;  %v870_v59 = vmul.f32 %v1295_v53, %v1463_v30  ;;  %vm875_vm10 = vweird.f32 %v1295_v53 }
 0x201   : > { %v867_v60 = vsel %vm1470_vm1, %v866_v50, %v862_v57  ;;  %v832_v61 = vsel %vm831_vm4, %v1287_v31, %v828_v54  ;;  %vm876_vm12 = vmor %vm874_vm11, %vm875_vm10  ;;  %v851_v24 = vor.u32 1.1754944e-38, %v850_v15  ;;  %vm849_vm3 = vcmp.eq.f32.partialorder %v848_v14, 8.507059e+37 }
 0x202   : > { %889 = vst.msk [vmem:[%s1526_s7 + $0x20] sm:$0xff] %vm884_vm13, %v867_v60  ;;  %v837_v62 = vsel %vm834_vm6, %v836_v51, %v832_v61  ;;  %v798_v63 = vadd.f32 %v1293_v41, %v797_v58  ;;  %v871_v0 = vsub.f32 1.0, %v870_v59  ;;  %v1297_v1 = vpop.eup %1296  ;;  %vm814_vm4 = vweird.f32 %v1468_v43 }
 0x203   : > { %887 = vst.msk [vmem:[%s1526_s7 + $0x10] sm:$0xff] %vm884_vm13, %v837_v62  ;;  %v840_v7 = vmul.f32 %v1297_v1, %v1466_v40  ;;  %v1299_v8 = vpop.eup %1298  ;;  %vm845_vm15 = vweird.f32 %v1297_v1  ;;  %v821_v28 = vor.u32 1.1754944e-38, %v820_v20  ;;  %vm819_vm6 = vcmp.eq.f32.partialorder %v818_v23, 8.507059e+37 }
 0x204   : > { %v802_v5 = vsel %vm801_vm8, %v1293_v41, %v798_v63  ;;  %v872_v6 = vmul.f32 %v1295_v53, %v871_v0  ;;  %v810_v12 = vmul.f32 %v1299_v8, %v1468_v43  ;;  %vm815_vm1 = vweird.f32 %v1299_v8  ;;  %vm846_vm2 = vmor %vm844_vm0, %vm845_vm15 }
 0x205   : > { %v807_v9 = vsel %vm804_vm9, %v806_v2, %v802_v5  ;;  %v841_v11 = vsub.f32 1.0, %v840_v7  ;;  %vm816_vm5 = vmor %vm814_vm4, %vm815_vm1 }
 0x206   : > { %885 = vst.msk [vmem:[%s1526_s7] sm:$0xff] %vm884_vm13, %v807_v9  ;;  %v873_v10 = vadd.f32 %v1295_v53, %v872_v6  ;;  %v811_v18 = vsub.f32 1.0, %v810_v12 }
 0x207   : > { %v842_v17 = vmul.f32 %v1297_v1, %v841_v11 }
 0x208   : > { %v877_v16 = vsel %vm876_vm12, %v1295_v53, %v873_v10  ;;  %v812_v22 = vmul.f32 %v1299_v8, %v811_v18 }
 0x209   : > { %v882_v19 = vsel %vm879_vm14, %v881_v13, %v877_v16  ;;  %v843_v21 = vadd.f32 %v1297_v1, %v842_v17 }
 0x20a   : > { %890 = vst.msk [vmem:[%s1526_s7 + $0x28] sm:$0xff] %vm884_vm13, %v882_v19  ;;  %v813_v26 = vadd.f32 %v1299_v8, %v812_v22 }
 0x20b   : > { %v847_v25 = vsel %vm846_vm2, %v1297_v1, %v843_v21 }
 0x20c   : > { %v852_v27 = vsel %vm849_vm3, %v851_v24, %v847_v25  ;;  %v817_v29 = vsel %vm816_vm5, %v1299_v8, %v813_v26 }
 0x20d   : > { %888 = vst.msk [vmem:[%s1526_s7 + $0x18] sm:$0xff] %vm884_vm13, %v852_v27  ;;  %v822_v30 = vsel %vm819_vm6, %v821_v28, %v817_v29 }
 0x20e   : > { %886 = vst.msk [vmem:[%s1526_s7 + $0x8] sm:$0xff] %vm884_vm13, %v822_v30 }
 0x20f PF: > { %s19_s24 = sadd.s32 1, %s1325_s24  }
 0x210   : > { %p16_p1 = scmp.ge.s32.totalorder %s19_s24, 5  }
 0x212   :  { %18 = sbr.rel (!%p16_p1) target bundleno = 1 (0x1), region = 119 }
 0x217   :  { %989 = vsyncpa [#allocation3], 1 }
 0x218   :  { %991 = vsyncpa [#allocation3 + $0x1], 1 }

</bundles_post_ra>
